<compile_context>
chip_gen: v7x
topology: tpu7x:2x2x1
jax: 0.10.0
libtpu: 0.0.40
codegen_flags: <defaults>
</compile_context>

<pallas_src>
from functools import partial

import jax
import jax.numpy as jnp
from jax.experimental import pallas as pl
from jax.experimental.pallas import tpu as pltpu

_MIB = 1024 * 1024
_VMEM_BUDGET = 22 * _MIB        # target per-call working set (fits v5e/v6e/v7x)


# ---------------------------------------------------------------------------
# Tiling / compiler-params helpers
# ---------------------------------------------------------------------------

def _pick_tile(dim, target, granule):
    """Largest t <= min(target, dim) with dim % t == 0 and t % granule == 0.

    Falls back to the full dimension (always a legal Pallas block) only when
    no granule-aligned divisor exists (e.g. prime dims)."""
    target = min(target, dim)
    t = (target // granule) * granule
    while t >= granule:
        if dim % t == 0:
            return t
        t -= granule
    return dim


def _next_smaller_tile(dim, cur, granule):
    """Next smaller legal tile (or None if none exists)."""
    if cur <= granule:
        return None
    cand = _pick_tile(dim, cur - granule, granule)
    return cand if cand < cur else None


def _row_tile(M, block_m, sub):
    """Row tile: as big as requested, but keep >= 2 row blocks so the
    'parallel' row axis can actually be sharded across both v7x TensorCores."""
    cap = block_m
    if M >= 2 * sub:
        cap = min(cap, max(sub, M // 2))
    return _pick_tile(M, cap, sub)


def _compiler_params(semantics, est_bytes):
    # Raise the scoped-VMEM default (16 MiB on v5e, 32 MiB on v6e/v7x) with
    # headroom, but stay well under v7x's 64 MiB *physical* VMEM.
    limit = int(min(max(32 * _MIB, est_bytes + 8 * _MIB), 56 * _MIB))
    return pltpu.CompilerParams(dimension_semantics=semantics,
                                vmem_limit_bytes=limit)


def _layernorm_f32(z, gamma, beta, eps):
    # One-pass mean/variance: the two cross-lane (XLU) reductions are
    # independent and can overlap (vs. being serialised by `z - mean`).
    inv_n = 1.0 / z.shape[-1]
    mean = jnp.sum(z, axis=-1, keepdims=True) * inv_n
    ex2 = jnp.sum(z * z, axis=-1, keepdims=True) * inv_n
    var = jnp.maximum(ex2 - mean * mean, 0.0)
    zn = (z - mean) * jax.lax.rsqrt(var + eps)
    return zn * gamma + beta


# ---------------------------------------------------------------------------
# Kernel 1a: single K step — weight resident in VMEM, no accumulator
# ---------------------------------------------------------------------------

def _fused_full_k_kernel(*refs, eps, has_residual):
    if has_residual:
        x_ref, w_ref, b_ref, g_ref, bt_ref, r_ref, o_ref = refs
    else:
        x_ref, w_ref, b_ref, g_ref, bt_ref, o_ref = refs
        r_ref = None
    z = jnp.dot(x_ref[...], w_ref[...], preferred_element_type=jnp.float32)
    z = z + b_ref[...].astype(jnp.float32)
    if has_residual:
        z = z + r_ref[...].astype(jnp.float32)
    o_ref[...] = _layernorm_f32(
        z, g_ref[...].astype(jnp.float32), bt_ref[...].astype(jnp.float32),
        eps).astype(o_ref.dtype)


# ---------------------------------------------------------------------------
# Kernel 1b: K-split — f32 VMEM accumulator, LayerNorm epilogue on last K step
# ---------------------------------------------------------------------------

def _fused_ksplit_kernel(*refs, eps, has_residual):
    if has_residual:
        x_ref, w_ref, b_ref, g_ref, bt_ref, r_ref, o_ref, acc_ref = refs
    else:
        x_ref, w_ref, b_ref, g_ref, bt_ref, o_ref, acc_ref = refs
        r_ref = None

    k = pl.program_id(1)

    @pl.when(k == 0)
    def _():
        # Seed the accumulator with bias (+ residual): removes the zero store
        # and two epilogue adds, and lets the residual DMA overlap the first
        # K steps instead of sitting on the epilogue critical path.
        init = jnp.broadcast_to(b_ref[...].astype(jnp.float32), acc_ref.shape)
        if has_residual:
            init = init + r_ref[...].astype(jnp.float32)
        acc_ref[...] = init

    acc_ref[...] += jnp.dot(x_ref[...], w_ref[...],
                            preferred_element_type=jnp.float32)

    @pl.when(k == pl.num_programs(1) - 1)
    def _():
        o_ref[...] = _layernorm_f32(
            acc_ref[...], g_ref[...].astype(jnp.float32),
            bt_ref[...].astype(jnp.float32), eps).astype(o_ref.dtype)


def fused_linear_residual_layernorm(x2d, w, b, gamma, beta, *, residual=None,
                                    eps=1e-6, block_m=512, block_k=512,
                                    out_dtype=None):
    """LayerNorm(x2d @ w + b [+ residual]) over the last dim.

    x2d: (M, K)   w: (K, N)   b/gamma/beta: (N,)   residual: (M, N) or None.
    x2d / w may be bf16 (full-rate MXU path); accumulation is always f32.
    """
    M, K = x2d.shape
    Kw, N = w.shape
    assert Kw == K
    out_dtype = jnp.dtype(out_dtype if out_dtype is not None else x2d.dtype)
    has_residual = residual is not None

    xb = jnp.dtype(x2d.dtype).itemsize
    wb = jnp.dtype(w.dtype).itemsize
    ob = out_dtype.itemsize
    rb = jnp.dtype(residual.dtype).itemsize if has_residual else 0
    sub = 16 if xb < 4 else 8          # sublane granule of the activation tile

    b2 = b.reshape(1, N).astype(jnp.float32)
    g2 = gamma.reshape(1, N).astype(jnp.float32)
    bt2 = beta.reshape(1, N).astype(jnp.float32)

    tm = _row_tile(M, block_m, sub)

    # ---- path a: single K step, whole weight resident in VMEM --------------
    def _full_k_bytes(tm_):
        return (2 * K * N * wb + 2 * tm_ * K * xb + 2 * tm_ * N * ob
                + 2 * tm_ * N * rb + 6 * N * 4)

    if block_k >= K and _full_k_bytes(tm) <= _VMEM_BUDGET:
        in_specs = [
            pl.BlockSpec((tm, K), lambda i: (i, 0)),   # activation row tile
            pl.BlockSpec((K, N), lambda i: (0, 0)),    # weight: DMA'd once, resident
            pl.BlockSpec((1, N), lambda i: (0, 0)),    # bias
            pl.BlockSpec((1, N), lambda i: (0, 0)),    # gamma
            pl.BlockSpec((1, N), lambda i: (0, 0)),    # beta
        ]
        args = [x2d, w, b2, g2, bt2]
        if has_residual:
            in_specs.append(pl.BlockSpec((tm, N), lambda i: (i, 0)))
            args.append(residual)
        return pl.pallas_call(
            partial(_fused_full_k_kernel, eps=eps, has_residual=has_residual),
            out_shape=jax.ShapeDtypeStruct((M, N), out_dtype),
            grid=(M // tm,),
            in_specs=in_specs,
            out_specs=pl.BlockSpec((tm, N), lambda i: (i, 0)),
            compiler_params=_compiler_params(("parallel",), _full_k_bytes(tm)),
        )(*args)

    # ---- path b: (rows, K) grid with f32 VMEM accumulator ------------------
    tk = _pick_tile(K, block_k, 128)

    def _split_bytes(tm_, tk_):
        return (2 * tm_ * tk_ * xb + 2 * tk_ * N * wb + 2 * tm_ * N * ob
                + tm_ * N * 4 + 2 * tm_ * N * rb + 6 * N * 4)

    # Shrink tk (then tm) if the footprint would not fit the VMEM budget.
    while _split_bytes(tm, tk) > _VMEM_BUDGET:
        nxt = _next_smaller_tile(K, tk, 128)
        if nxt is None:
            nxt = _next_smaller_tile(M, tm, sub)
            if nxt is None:
                break
            tm = nxt
        else:
            tk = nxt

    nm, nk = M // tm, K // tk

    in_specs = [
        pl.BlockSpec((tm, tk), lambda i, k: (i, k)),   # activation tile
        pl.BlockSpec((tk, N), lambda i, k: (k, 0)),    # weight tile (lane-dense N)
        pl.BlockSpec((1, N), lambda i, k: (0, 0)),     # bias   (resident over K)
        pl.BlockSpec((1, N), lambda i, k: (0, 0)),     # gamma  (resident over K)
        pl.BlockSpec((1, N), lambda i, k: (0, 0)),     # beta   (resident over K)
    ]
    args = [x2d, w, b2, g2, bt2]
    if has_residual:
        # residual row block stays resident across the K axis (index ignores k)
        in_specs.append(pl.BlockSpec((tm, N), lambda i, k: (i, 0)))
        args.append(residual)

    return pl.pallas_call(
        partial(_fused_ksplit_kernel, eps=eps, has_residual=has_residual),
        out_shape=jax.ShapeDtypeStruct((M, N), out_dtype),
        grid=(nm, nk),
        in_specs=in_specs,
        out_specs=pl.BlockSpec((tm, N), lambda i, k: (i, 0)),
        scratch_shapes=[pltpu.VMEM((tm, N), jnp.float32)],
        compiler_params=_compiler_params(("parallel", "arbitrary"),
                                         _split_bytes(tm, tk)),
    )(*args)


# ---------------------------------------------------------------------------
# Kernel 2: generic residual add + LayerNorm (arbitrary inner module output)
# ---------------------------------------------------------------------------

def _res_ln_kernel(y_ref, r_ref, g_ref, bt_ref, o_ref, *, eps):
    z = y_ref[...].astype(jnp.float32) + r_ref[...].astype(jnp.float32)
    o_ref[...] = _layernorm_f32(
        z, g_ref[...].astype(jnp.float32), bt_ref[...].astype(jnp.float32),
        eps).astype(o_ref.dtype)


def residual_layernorm(y2d, r2d, gamma, beta, *, eps=1e-6, block_m=512):
    """LayerNorm(r2d + y2d) over the last dim, row-tiled (HBM-bandwidth bound
    -> use large row tiles to hit the mem-bound roofline)."""
    M, N = y2d.shape
    sub = 16 if jnp.dtype(y2d.dtype).itemsize < 4 else 8
    tm = _row_tile(M, block_m, sub)
    est = 2 * tm * N * (y2d.dtype.itemsize + r2d.dtype.itemsize
                        + y2d.dtype.itemsize) + 4 * N * 4
    return pl.pallas_call(
        partial(_res_ln_kernel, eps=eps),
        out_shape=jax.ShapeDtypeStruct((M, N), y2d.dtype),
        grid=(M // tm,),
        in_specs=[
            pl.BlockSpec((tm, N), lambda i: (i, 0)),
            pl.BlockSpec((tm, N), lambda i: (i, 0)),
            pl.BlockSpec((1, N), lambda i: (0, 0)),
            pl.BlockSpec((1, N), lambda i: (0, 0)),
        ],
        out_specs=pl.BlockSpec((tm, N), lambda i: (i, 0)),
        compiler_params=_compiler_params(("parallel",), est),
    )(y2d, r2d, gamma.reshape(1, N).astype(jnp.float32),
      beta.reshape(1, N).astype(jnp.float32))


# ---------------------------------------------------------------------------
# LayerNormResidual forward (inner module = Linear; dropout = identity / eval)
# ---------------------------------------------------------------------------

def prepare_params(params, compute_dtype=jnp.bfloat16):
    """One-time parameter preparation — do this at load time, NOT per forward.

    * Folds a Linear shortcut into the module matmul:
        x@W_sc + b_sc + x@W_mod + b_mod = x@(W_sc + W_mod) + (b_sc + b_mod)
      (valid only with dropout = identity, i.e. eval mode).
    * Casts the matmul weight to the MXU fast-path dtype (bf16 by default);
      bias / gamma / beta stay f32 for the epilogue.
    """
    w = params["w_mod"]
    b = params["b_mod"]
    folded = params.get("w_sc") is not None
    if folded:
        w = w + params["w_sc"]
        b = b + params["b_sc"]
    return {
        "w": jnp.asarray(w, compute_dtype),
        "b": jnp.asarray(b, jnp.float32),
        "g": jnp.asarray(params["g"], jnp.float32),
        "bta": jnp.asarray(params["bta"], jnp.float32),
        "folded_shortcut": folded,
    }


def layer_norm_residual_forward(x, prepared, *, eps=1e-6, block_m=512,
                                block_k=512):
    """out = LayerNorm( shortcut(x) + Linear_module(x) ), LayerNorm over last dim.

    x: (..., input_size) -> (..., output_size).  Weights are stored (in, out)
    (PyTorch Linear weight transposed).  `prepared` comes from prepare_params.
    """
    in_size = x.shape[-1]
    out_size = prepared["w"].shape[1]
    lead = x.shape[:-1]
    x2d = x.reshape(-1, in_size)
    xc = x2d.astype(prepared["w"].dtype)              # MXU operand dtype (bf16 fast path)
    residual = None if prepared["folded_shortcut"] else x2d   # identity shortcut
    out = fused_linear_residual_layernorm(
        xc, prepared["w"], prepared["b"], prepared["g"], prepared["bta"],
        residual=residual, eps=eps, block_m=block_m, block_k=block_k,
        out_dtype=x.dtype)
    return out.reshape(*lead, out_size)


# ---------------------------------------------------------------------------
# Pure-JAX reference (PyTorch semantics) for verification
# ---------------------------------------------------------------------------

def reference_forward(x, params, eps=1e-6):
    hp = jax.lax.Precision.HIGHEST
    y = jnp.dot(x, params["w_mod"], precision=hp) + params["b_mod"]
    if params.get("w_sc") is not None:
        sc = jnp.dot(x, params["w_sc"], precision=hp) + params["b_sc"]
    else:
        sc = x
    z = sc + y
    mean = jnp.mean(z, axis=-1, keepdims=True)
    var = jnp.mean((z - mean) ** 2, axis=-1, keepdims=True)
    return (z - mean) / jnp.sqrt(var + eps) * params["g"] + params["bta"]


# ---------------------------------------------------------------------------
# Driver
# ---------------------------------------------------------------------------

if __name__ == "__main__":
    key = jax.random.PRNGKey(0)
    k1, k2, k3, k4, k5, k6, k7, k8 = jax.random.split(key, 8)

    seq, batch = 8, 32          # M = 256 rows -> 2 row tiles (both v7x cores busy)
    eps = 1e-6

    # ---- case 1: input_size != output_size  (Linear shortcut folded) --------
    in_size, out_size = 256, 128
    x1 = jax.random.normal(k1, (seq, batch, in_size), jnp.float32)
    params1 = {
        "w_mod": 0.05 * jax.random.normal(k2, (in_size, out_size), jnp.float32),
        "b_mod": 0.05 * jax.random.normal(k3, (out_size,), jnp.float32),
        "w_sc":  0.05 * jax.random.normal(k4, (in_size, out_size), jnp.float32),
        "b_sc":  0.05 * jax.random.normal(k5, (out_size,), jnp.float32),
        "g":   jnp.ones((out_size,), jnp.float32)
               + 0.1 * jax.random.normal(k6, (out_size,), jnp.float32),
        "bta": 0.1 * jax.random.normal(k7, (out_size,), jnp.float32),
    }
    ref1 = reference_forward(x1, params1, eps=eps)

    prep1 = prepare_params(params1, compute_dtype=jnp.bfloat16)   # bf16 MXU path
    # 1a: single-K-step path (weight resident in VMEM)
    out1a = jax.block_until_ready(layer_norm_residual_forward(x1, prep1, eps=eps))
    assert out1a.shape == (seq, batch, out_size)
    assert bool(jnp.all(jnp.isfinite(out1a)))
    assert bool(jnp.max(jnp.abs(out1a - ref1)) < 5e-2), "case 1a (bf16, full-K)"
    # 1b: force the K-split accumulator path
    out1b = jax.block_until_ready(
        layer_norm_residual_forward(x1, prep1, eps=eps, block_k=128))
    assert bool(jnp.max(jnp.abs(out1b - ref1)) < 5e-2), "case 1b (bf16, K-split)"

    # ---- case 2: input_size == output_size  (identity shortcut, residual) ---
    size = 256
    x2 = jax.random.normal(k8, (seq, batch, size), jnp.float32)
    params2 = {
        "w_mod": 0.05 * jax.random.normal(k3, (size, size), jnp.float32),
        "b_mod": 0.05 * jax.random.normal(k4, (size,), jnp.float32),
        "w_sc": None, "b_sc": None,
        "g":   jnp.ones((size,), jnp.float32),
        "bta": jnp.zeros((size,), jnp.float32),
    }
    ref2 = reference_forward(x2, params2, eps=eps)

    prep2 = prepare_params(params2, compute_dtype=jnp.float32)    # f32 validation path
    out2a = jax.block_until_ready(layer_norm_residual_forward(x2, prep2, eps=eps))
    assert bool(jnp.max(jnp.abs(out2a - ref2)) < 2e-3), "case 2a (f32, full-K)"
    out2b = jax.block_until_ready(
        layer_norm_residual_forward(x2, prep2, eps=eps, block_k=128))
    assert bool(jnp.max(jnp.abs(out2b - ref2)) < 2e-3), "case 2b (f32, K-split)"

    # ---- case 3: arbitrary inner module computed outside, fused add+LN ------
    y3 = jax.nn.gelu(x2)        # stand-in for an arbitrary self.module output
    out3 = jax.block_until_ready(
        residual_layernorm(y3.reshape(-1, size), x2.reshape(-1, size),
                           params2["g"], params2["bta"], eps=eps)
    ).reshape(seq, batch, size)
    z = x2 + y3
    m = jnp.mean(z, -1, keepdims=True)
    v = jnp.mean((z - m) ** 2, -1, keepdims=True)
    ref3 = (z - m) / jnp.sqrt(v + eps) * params2["g"] + params2["bta"]
    assert bool(jnp.max(jnp.abs(out3 - ref3)) < 2e-3), "case 3 (generic add+LN)"

    print("KERNEL_OK")
</pallas_src>

<mosaic_0001>
module attributes {stable_mosaic.version = 11 : i64} {
  func.func @_fused_full_k_kernel(%arg0: i32, %arg1: memref<128x256xbf16, #tpu.memory_space<vmem>>, %arg2: memref<256x128xbf16, #tpu.memory_space<vmem>>, %arg3: memref<1x128xf32, #tpu.memory_space<vmem>>, %arg4: memref<1x128xf32, #tpu.memory_space<vmem>>, %arg5: memref<1x128xf32, #tpu.memory_space<vmem>>, %arg6: memref<128x128xf32, #tpu.memory_space<vmem>>) attributes {dimension_semantics = [#tpu.dimension_semantics<parallel>], iteration_bounds = array<i64: 2>, scalar_prefetch = 0 : i64, scratch_operands = 0 : i64, tpu.core_type = #tpu.core_type<tc>, window_params = [{transform_indices = @transform_0, window_bounds = array<i64: 128, 256>}, {pipeline_mode = #tpu.pipeline_mode<synchronous>, transform_indices = @transform_1, window_bounds = array<i64: 256, 128>}, {pipeline_mode = #tpu.pipeline_mode<synchronous>, transform_indices = @transform_2, window_bounds = array<i64: 1, 128>}, {pipeline_mode = #tpu.pipeline_mode<synchronous>, transform_indices = @transform_3, window_bounds = array<i64: 1, 128>}, {pipeline_mode = #tpu.pipeline_mode<synchronous>, transform_indices = @transform_4, window_bounds = array<i64: 1, 128>}, {transform_indices = @transform_5, window_bounds = array<i64: 128, 128>}]} {
    %c0 = arith.constant 0 : index
    %c0_0 = arith.constant 0 : index
    %0 = vector.load %arg1[%c0, %c0_0] : memref<128x256xbf16, #tpu.memory_space<vmem>>, vector<128x256xbf16>
    %c0_1 = arith.constant 0 : index
    %c0_2 = arith.constant 0 : index
    %1 = vector.load %arg2[%c0_1, %c0_2] : memref<256x128xbf16, #tpu.memory_space<vmem>>, vector<256x128xbf16>
    %cst = arith.constant dense<0.000000e+00> : vector<128x128xf32>
    %2 = tpu.matmul %0, %1, %cst {dimension_numbers = #tpu.dot_dimension_numbers<[1], [0], [0], [1], [0, 0, 1, 1], [], []>} : vector<128x256xbf16>, vector<256x128xbf16>, vector<128x128xf32> -> vector<128x128xf32>
    %c0_3 = arith.constant 0 : index
    %c0_4 = arith.constant 0 : index
    %3 = vector.load %arg3[%c0_3, %c0_4] : memref<1x128xf32, #tpu.memory_space<vmem>>, vector<1x128xf32>
    %4 = vector.broadcast %3 : vector<1x128xf32> to vector<128x128xf32>
    %5 = arith.addf %2, %4 : vector<128x128xf32>
    %c0_5 = arith.constant 0 : index
    %c0_6 = arith.constant 0 : index
    %6 = vector.load %arg4[%c0_5, %c0_6] : memref<1x128xf32, #tpu.memory_space<vmem>>, vector<1x128xf32>
    %c0_7 = arith.constant 0 : index
    %c0_8 = arith.constant 0 : index
    %7 = vector.load %arg5[%c0_7, %c0_8] : memref<1x128xf32, #tpu.memory_space<vmem>>, vector<1x128xf32>
    %cst_9 = arith.constant dense<0.000000e+00> : vector<128xf32>
    %8 = vector.multi_reduction <add>, %5, %cst_9 [1] : vector<128x128xf32> to vector<128xf32>
    %9 = vector.shape_cast %8 : vector<128xf32> to vector<128x1xf32>
    %cst_10 = arith.constant 7.812500e-03 : f32
    %10 = vector.broadcast %cst_10 : f32 to vector<128x1xf32>
    %11 = arith.mulf %9, %10 : vector<128x1xf32>
    %12 = arith.mulf %5, %5 : vector<128x128xf32>
    %cst_11 = arith.constant dense<0.000000e+00> : vector<128xf32>
    %13 = vector.multi_reduction <add>, %12, %cst_11 [1] : vector<128x128xf32> to vector<128xf32>
    %14 = vector.shape_cast %13 : vector<128xf32> to vector<128x1xf32>
    %cst_12 = arith.constant 7.812500e-03 : f32
    %15 = vector.broadcast %cst_12 : f32 to vector<128x1xf32>
    %16 = arith.mulf %14, %15 : vector<128x1xf32>
    %17 = arith.mulf %11, %11 : vector<128x1xf32>
    %18 = arith.subf %16, %17 : vector<128x1xf32>
    %cst_13 = arith.constant 0.000000e+00 : f32
    %19 = vector.broadcast %cst_13 : f32 to vector<128x1xf32>
    %20 = arith.maximumf %18, %19 : vector<128x1xf32>
    %21 = vector.broadcast %11 : vector<128x1xf32> to vector<128x128xf32>
    %22 = arith.subf %5, %21 : vector<128x128xf32>
    %cst_14 = arith.constant 9.99999997E-7 : f32
    %23 = vector.broadcast %cst_14 : f32 to vector<128x1xf32>
    %24 = arith.addf %20, %23 : vector<128x1xf32>
    %25 = math.rsqrt %24 : vector<128x1xf32>
    %26 = vector.broadcast %25 : vector<128x1xf32> to vector<128x128xf32>
    %27 = arith.mulf %22, %26 : vector<128x128xf32>
    %28 = vector.broadcast %6 : vector<1x128xf32> to vector<128x128xf32>
    %29 = arith.mulf %27, %28 : vector<128x128xf32>
    %30 = vector.broadcast %7 : vector<1x128xf32> to vector<128x128xf32>
    %31 = arith.addf %29, %30 : vector<128x128xf32>
    %c0_15 = arith.constant 0 : index
    %c0_16 = arith.constant 0 : index
    %32 = vector.load %arg6[%c0_15, %c0_16] : memref<128x128xf32, #tpu.memory_space<vmem>>, vector<128x128xf32>
    tpu.vector_store %arg6[%c0_15, %c0_16], %31 {strides = array<i32>} : memref<128x128xf32, #tpu.memory_space<vmem>>, vector<128x128xf32>,
    return
  }
  func.func @transform_0(%arg0: i32) -> (i32, i32) {
    %c0_i32 = arith.constant 0 : i32
    %c0_i32_0 = arith.constant 0 : i32
    return %arg0, %c0_i32 : i32, i32
  }
  func.func @transform_1(%arg0: i32) -> (i32, i32) {
    %c0_i32 = arith.constant 0 : i32
    %c0_i32_0 = arith.constant 0 : i32
    %c0_i32_1 = arith.constant 0 : i32
    return %c0_i32, %c0_i32_0 : i32, i32
  }
  func.func @transform_2(%arg0: i32) -> (i32, i32) {
    %c0_i32 = arith.constant 0 : i32
    %c0_i32_0 = arith.constant 0 : i32
    %c0_i32_1 = arith.constant 0 : i32
    return %c0_i32, %c0_i32_0 : i32, i32
  }
  func.func @transform_3(%arg0: i32) -> (i32, i32) {
    %c0_i32 = arith.constant 0 : i32
    %c0_i32_0 = arith.constant 0 : i32
    %c0_i32_1 = arith.constant 0 : i32
    return %c0_i32, %c0_i32_0 : i32, i32
  }
  func.func @transform_4(%arg0: i32) -> (i32, i32) {
    %c0_i32 = arith.constant 0 : i32
    %c0_i32_0 = arith.constant 0 : i32
    %c0_i32_1 = arith.constant 0 : i32
    return %c0_i32, %c0_i32_0 : i32, i32
  }
  func.func @transform_5(%arg0: i32) -> (i32, i32) {
    %c0_i32 = arith.constant 0 : i32
    %c0_i32_0 = arith.constant 0 : i32
    return %arg0, %c0_i32 : i32, i32
  }
}

</mosaic_0001>

<bundles_post_ra>
// kernel: tpu_custom_call.1
= control target key start
LH: loop header
LB: loop body
LE: loop exit
PB: predicated region body
PF: predicated region fallthrough
CT: control target
= control target key end

     0   :  { %10 = vsyncpa [#allocation3], 0  ;;  %s1888_s0 = inlined_call_operand.hbm [shape: bf16[256,256], index: 0, kind: input, shape index: {}]   ;;  %s1889_s1 = inlined_call_operand.hbm [shape: bf16[256,128], index: 1, kind: input, shape index: {}]   ;;  %s1890_s2 = inlined_call_operand.vmem [shape: f32[1,128], index: 2, kind: input, shape index: {}]   ;;  %s1891_s3 = inlined_call_operand.vmem [shape: f32[1,128], index: 3, kind: input, shape index: {}]   ;;  %s1892_s4 = inlined_call_operand.vmem [shape: f32[1,128], index: 4, kind: input, shape index: {}]   ;;  %s1893_s5 = inlined_call_operand.hbm [shape: f32[256,128], index: 5, kind: output, shape index: {}]  }
   0x1   :  { %12 = vsyncpa [#allocation3 + $0x1], 0 }
   0x2   :  { %13 = vsyncpa [#allocation6], 0 }
   0x3   :  { %14 = vsyncpa [#allocation4], 0 }
   0x4   :  { %16 = vsyncpa [#allocation4 + $0x1], 0  ;;  %s1412_s18 = smov 0   ;;  %s1414_s19 = smov 0  }
   0x5   :  { %s1416_s20 = smov 0   ;;  %s1418_s21 = smov 0  }
   0x6 LB: > { %s1433_s22 = sadd.s32 4294967295, %s1371_s21   ;;  %s973_s23 = sadd.s32 4294967294, %s1371_s21   ;;  %s1371_s21 = sphi %s1418_s21, %s1913_s21   ;;  %s1367_s20 = sphi %s1416_s20, %s1912_s20   ;;  %s1363_s19 = sphi %s1414_s19, %s1911_s19   ;;  %s1359_s18 = sphi %s1412_s18, %s1910_s18  }
   0x7   : > { %p42_p0 = scmp.ne.s32.totalorder %s1363_s19, %s1359_s18  ;;  %p1894_p1 = scmp.eq.s32.totalorder %s1433_s22, 0 }
   0x8   : > { %p156_p3 = scmp.eq.s32.totalorder %s973_s23, 1  ;;  %p974_p5 = scmp.ge.s32.totalorder %s1371_s21, 1 }
   0x9   : > { %p1442_p4 = por %p1894_p1, %p42_p0  ;;  %p163_p7 = scmp.lt.s32.totalorder %s1371_s21, 3 }
   0xa   : > { %p1447_p6 = por %p156_p3, %p42_p0  ;;  %s1373_s27 = smov [#allocation5]  }
   0xb   : > { %s1897_s24 = scalar_select %p1442_p4, 1, 0 }
   0xc   : > { %s1898_s25 = scalar_select %p1447_p6, 1, 0 }
   0xd   : > { %p1452_p8 = pnand %p974_p5, %p163_p7  ;;  %s175_s28 = sshll.u32 %s1373_s27, 4  ;;  %s1456_s28 = int_to_ptr.vmem [resolvable:$true] %s175_s28 }
   0xe   : > { %s1468_s30 = sadd.s32 1, %s1371_s21   ;;  %s29_s6 = sadd.s32 1, %s1367_s20 }
   0xf   : > { %s1899_s26 = scalar_select %p1452_p8, 1, 0 }
  0x10   : > { %p1116_p9 = pneg %p1452_p8  ;;  %s26_s7 = ssub.s32 %s1371_s21, %s1468_s30 }
  0x11   : > { %s1243_s10 = scalar_lea.hbm %s1889_s1, 2048 }
  0x12   : > { %p1463_p11 = pnand %p1116_p9, %p1894_p1  ;;  %p1244_p12 = scmp.ne.s32.totalorder %s1889_s1, %s1243_s10 }
  0x13   : > { %p1250_p5 = scmp.lt.u32.totalorder %s1243_s10, %s1889_s1 }
  0x14   : > { %p1245_p13 = pneg %p1463_p11 }
  0x16   : > { %p1246_p0 = pnand %p1245_p13, %p1244_p12 }
  0x18   : > { %p1247_p3 = pneg %p1246_p0 }
  0x1a   : > { %p1252_p7 = pnand %p1250_p5, %p1247_p3 }
  0x1c   : > { %1255 = shalt.err (!%p1252_p7)
}
  0x1d   : > { %s1256_s15 = scalar_lea.vmem %s1456_s28, 2048  ;;  %p1264_p2 = scmp.lt.s32.totalorder %s1456_s28, %s1456_s28 }
  0x1e   : > { %p1257_p9 = scmp.ne.s32.totalorder %s1456_s28, %s1256_s15  ;;  %p1265_p6 = scmp.lt.s32.totalorder %s1256_s15, %s1256_s15 }
  0x20   : > { %p1259_p10 = pnand %p1257_p9, %p1245_p13  ;;  %p1266_p4 = por %p1265_p6, %p1264_p2 }
  0x22   : > { %p1260_p1 = pneg %p1259_p10 }
  0x24   : > { %p1267_p8 = pnand %p1266_p4, %p1260_p1 }
  0x26   : > { %1270 = shalt.err (!%p1267_p8)
}
  0x27   : > { %s1374_s16 = smov 64   ;;  %s1375_s17 = smov 4  }
  0x28   : > { %1119 = dma.hbm_to_vmem [thread:$0]  (!%p1463_p11), %s1889_s1, 2048, %s1456_s28, [#allocation6], %s1374_s16, %s1374_s16, %s1375_s17  }
  0x29   : > { %p27_p2 = scmp.eq.s32.totalorder %s26_s7, 0  ;;  %p36_p1 = scmp.ne.s32.totalorder %s1367_s20, %s1363_s19 }
  0x2a   : > { %p37_p4 = scmp.eq.s32.totalorder %s1371_s21, 0  ;;  %p1129_p6 = scmp.lt.s32.totalorder %s1371_s21, 2 }
  0x2b   : > { %s1499_s8 = scalar_select %p27_p2, %s1367_s20, %s29_s6  }
  0x2c   : > { %p38_p8 = por %p37_p4, %p36_p1  ;;  %p1901_p10 = scmp.eq.s32.totalorder %s1433_s22, 1 }
  0x2d   : > { %s198_s10 = sand.u32 1, %s1367_s20   ;;  %s1026_s11 = sshll.u32 %s1371_s21, 11 }
  0x2e   : > { %p1503_p12 = por %p1901_p10, %p36_p1  ;;  %s977_s12 = sshll.u32 %s198_s10, 7 }
  0x2f   : > { %s1512_s14 = scalar_lea.hbm %s1888_s0, %s1026_s11  ;;  %s202_s28 = scalar_lea.vmem [#allocation2], %s977_s12 }
  0x30   : > { %s210_s6 = sshll.u32 %s202_s28, 4  ;;  %p1514_p11 = pnand %p1129_p6, %p38_p8  ;;  %s1518_s6 = int_to_ptr.vmem [resolvable:$true] %s210_s6 }
  0x31   : > { %s1520_s15 = scalar_lea.sflag [#allocation3], %s198_s10  ;;  %s1271_s16 = scalar_lea.hbm %s1512_s14, 2048 }
  0x32   : > { %p1272_p13 = scmp.ne.s32.totalorder %s1512_s14, %s1271_s16  ;;  %p1273_p0 = pneg %p1514_p11 }
  0x33   : > { %s1276_s27 = scalar_lea.hbm %s1888_s0, 4096  ;;  %p1277_p7 = scmp.lt.u32.totalorder %s1512_s14, %s1888_s0 }
  0x34   : > { %p1274_p3 = pnand %p1273_p0, %p1272_p13  ;;  %p1278_p9 = scmp.lt.u32.totalorder %s1276_s27, %s1271_s16 }
  0x35   : > { %p1280_p1 = scmp.lt.u32.totalorder %s1271_s16, %s1512_s14 }
  0x36   : > { %p1275_p5 = pneg %p1274_p3  ;;  %p1279_p2 = por %p1278_p9, %p1277_p7 }
  0x38   : > { %p1281_p4 = por %p1280_p1, %p1279_p2 }
  0x3a   : > { %p1282_p6 = pnand %p1281_p4, %p1275_p5 }
  0x3c   : > { %1285 = shalt.err (!%p1282_p6)
}
  0x3d   : > { %s1286_s10 = scalar_lea.vmem %s1518_s6, 2048  ;;  %s1376_s29 = smov [#allocation2]  }
  0x3e   : > { %p1287_p8 = scmp.ne.s32.totalorder %s1518_s6, %s1286_s10  ;;  %s1291_s13 = sshll.u32 %s1376_s29, 4  ;;  %s1292_s13 = int_to_ptr.vmem [resolvable:$false] %s1291_s13 }
  0x3f   : > { %s1293_s28 = scalar_lea.vmem %s1292_s13, 4096  ;;  %p1294_p3 = scmp.lt.s32.totalorder %s1518_s6, %s1292_s13 }
  0x40   : > { %p1289_p10 = pnand %p1287_p8, %p1273_p0  ;;  %p1295_p7 = scmp.lt.s32.totalorder %s1293_s28, %s1286_s10 }
  0x42   : > { %p1290_p13 = pneg %p1289_p10  ;;  %p1296_p9 = por %p1295_p7, %p1294_p3 }
  0x44   : > { %p1297_p2 = pnand %p1296_p9, %p1290_p13 }
  0x46   : > { %1300 = shalt.err (!%p1297_p2)
}
  0x47   : > { %s1377_s16 = smov 128   ;;  %s1378_s17 = smov 8  }
  0x48   : > { %1123 = dma.hbm_to_vmem [thread:$0]  (!%p1514_p11), %s1512_s14, 2048, %s1518_s6, %s1520_s15, %s1377_s16, %s1377_s16, %s1378_s17  }
  0x49   : > { %p1904_p0 = scmp.ne.s32.totalorder %s1899_s26, 0 }
  0x4a   : > { %s1551_s23 = sand.u32 (!%p1904_p0), 1, %s1363_s19   ;;  %p1905_p5 = scmp.ne.s32.totalorder (!%p1904_p0), %s1897_s24, 0 }
  0x4b   : > { %222 = sbr.rel (%p1904_p0) target bundleno = 580 (0x244), region = 40  ;;  %s982_s27 = sshll.u32 (!%p1904_p0), %s1551_s23, 7 }
  0x4c   : > { %s225_s11 = scalar_lea.sflag (!%p1904_p0), [#allocation3], %s1551_s23  ;;  %s1557_s12 = scalar_lea.vmem (!%p1904_p0), [#allocation2], %s982_s27 }
  0x52   : > { %1346 = dma.done.wait (%p1905_p5), %s225_s11, 2048  }
  0x53   : > { %1348 = vsyncadd (%p1905_p5), %s225_s11, 4294965248  ;;  %p1906_p11 = scmp.eq.s32.totalorder %s1433_s22, 0 }
  0x55   : > { %1350 = dma.done.wait (%p1906_p11), [#allocation6], 2048   ;;  %p1907_p1 = pmov %p1906_p11 }
  0x56   : > { %v1171_v0 = vld [vmem:[#allocation5 + $0x40] sm:$0xff]   ;;  %v1173_v2 = vld [vmem:[#allocation5 + $0x48] sm:$0xff]   ;;  %v1175_v4 = vld [vmem:[#allocation5 + $0x50] sm:$0xff]   ;;  %s1736_s10 = scalar_lea.vmem [#allocation7], %s982_s27  ;;  %s1027_s29 = sshll.u32 %s1433_s22, 11 }
  0x57   : > { %1352 = vsyncadd (%p1907_p1), [#allocation6], 4294965248  ;;  %v1172_v1 = vld [vmem:[#allocation5] sm:$0xff]   ;;  %1028 = vmatprep.subr.bf16.mxu0 %v1171_v0  ;;  %1092 = vmatprep.subr.bf16.mxu1 %v1171_v0  ;;  %v1174_v3 = vld [vmem:[#allocation5 + $0x8] sm:$0xff]   ;;  %s890_s13 = sshll.u32 %s1736_s10, 4  ;;  %s1839_s17 = scalar_lea.hbm %s1893_s5, %s1027_s29  ;;  %s1841_s13 = int_to_ptr.vmem [resolvable:$true] %s890_s13 }
  0x58   : > { %1029 = vmatpush3.bf16.msra.mxu0 %v1172_v1  ;;  %1100 = vmatpush3.bf16.msra.mxu1 %v1172_v1  ;;  %v1176_v5 = vld [vmem:[#allocation5 + $0x10] sm:$0xff]   ;;  %v1177_v6 = vld [vmem:[#allocation5 + $0x58] sm:$0xff]   ;;  %v1179_v8 = vld [vmem:[#allocation5 + $0x60] sm:$0xff]   ;;  %s877_s22 = scalar_lea.sflag [#allocation4], %s1551_s23  ;;  %s1301_s27 = scalar_lea.vmem %s1841_s13, 2048 }
  0x59   : > { %1030 = vmatprep.subr.bf16.mxu0 %v1173_v2  ;;  %1093 = vmatprep.subr.bf16.mxu1 %v1173_v2  ;;  %v1178_v7 = vld [vmem:[#allocation5 + $0x18] sm:$0xff]   ;;  %v1180_v9 = vld [vmem:[#allocation5 + $0x20] sm:$0xff]   ;;  %v1181_v10 = vld [vmem:[#allocation5 + $0x68] sm:$0xff]   ;;  %p1302_p4 = scmp.ne.s32.totalorder %s1841_s13, %s1301_s27  ;;  %s1379_s11 = smov [#allocation7]  }
  0x5a   : > { %v1189_v11 = vld [vmem:[%s1557_s12 + $0x4] ss:$8 sps:$4 sm:$0xff]   ;;  %v1183_v14 = vld [vmem:[#allocation5 + $0x70] sm:$0xff]   ;;  %v1185_v16 = vld [vmem:[#allocation5 + $0x78] sm:$0xff]  }
  0x5b   : > { %v1192_v12 = vld [vmem:[%s1557_s12 + $0x44] ss:$8 sps:$4 sm:$0xff]   ;;  %525 = vmatprep.mubr.bf16.mxu0 %v1189_v11  ;;  %v1184_v15 = vld [vmem:[#allocation5 + $0x30] sm:$0xff]   ;;  %v1186_v17 = vld [vmem:[#allocation5 + $0x38] sm:$0xff]   ;;  %p1303_p6 = pnand %p1302_p4, %p1503_p12 }
  0x5c   : > { %1031 = vmatpush3.bf16.msra.mxu0 %v1174_v3  ;;  %1101 = vmatpush3.bf16.msra.mxu1 %v1174_v3  ;;  %v1182_v13 = vld [vmem:[#allocation5 + $0x28] sm:$0xff]   ;;  %v1193_v20 = vld [vmem:[%s1557_s12 + $0x14] ss:$8 sps:$4 sm:$0xff]   ;;  %v1195_v22 = vld [vmem:[%s1557_s12 + $0x10] ss:$8 sps:$4 sm:$0xff]  }
  0x5d   : > { %1032 = vmatprep.subr.bf16.mxu0 %v1175_v4  ;;  %1094 = vmatprep.subr.bf16.mxu1 %v1175_v4  ;;  %v1187_v18 = vld [vmem:[%s1557_s12] ss:$8 sps:$4 sm:$0xff]   ;;  %v1196_v21 = vld [vmem:[%s1557_s12 + $0x54] ss:$8 sps:$4 sm:$0xff]   ;;  %v1198_v23 = vld [vmem:[%s1557_s12 + $0x50] ss:$8 sps:$4 sm:$0xff]   ;;  %p1304_p8 = pneg %p1303_p6 }
  0x5e   : > { %557 = vmatprep.mubr.bf16.mxu1 %v1192_v12  ;;  %v1190_v19 = vld [vmem:[%s1557_s12 + $0x40] ss:$8 sps:$4 sm:$0xff]   ;;  %v1199_v24 = vld [vmem:[%s1557_s12 + $0x24] ss:$8 sps:$4 sm:$0xff]   ;;  %v1205_v28 = vld [vmem:[%s1557_s12 + $0x34] ss:$8 sps:$4 sm:$0xff]  }
  0x5f   : > { %v1202_v25 = vld [vmem:[%s1557_s12 + $0x64] ss:$8 sps:$4 sm:$0xff]   ;;  %v1201_v26 = vld [vmem:[%s1557_s12 + $0x20] ss:$8 sps:$4 sm:$0xff]   ;;  %v1208_v29 = vld [vmem:[%s1557_s12 + $0x74] ss:$8 sps:$4 sm:$0xff]  }
  0x60   : > { %1033 = vmatpush3.bf16.msra.mxu0 %v1176_v5  ;;  %1102 = vmatpush3.bf16.msra.mxu1 %v1176_v5  ;;  %v1204_v27 = vld [vmem:[%s1557_s12 + $0x60] ss:$8 sps:$4 sm:$0xff]   ;;  %v1207_v30 = vld [vmem:[%s1557_s12 + $0x30] ss:$8 sps:$4 sm:$0xff]  }
  0x61   : > { %1034 = vmatprep.subr.bf16.mxu0 %v1177_v6  ;;  %1095 = vmatprep.subr.bf16.mxu1 %v1177_v6  ;;  %v1210_v31 = vld [vmem:[%s1557_s12 + $0x70] ss:$8 sps:$4 sm:$0xff]   ;;  %v1586_v34 = vld [vmem:[%s1890_s2] ss:$0 sm:$0xff]  ;;  %s1305_s12 = sshll.u32 %s1379_s11, 4  ;;  %s1306_s12 = int_to_ptr.vmem [resolvable:$false] %s1305_s12 }
  0x62   : > { %s1307_s24 = scalar_lea.vmem %s1306_s12, 4096  ;;  %p1308_p10 = scmp.lt.s32.totalorder %s1841_s13, %s1306_s12 }
  0x63   : > { %p1309_p13 = scmp.lt.s32.totalorder %s1307_s24, %s1301_s27 }
  0x64   : > { %1035 = vmatpush3.bf16.msra.mxu0 %v1178_v7  ;;  %1103 = vmatpush3.bf16.msra.mxu1 %v1178_v7 }
  0x65   : > { %1036 = vmatprep.subr.bf16.mxu0 %v1179_v8  ;;  %1096 = vmatprep.subr.bf16.mxu1 %v1179_v8  ;;  %p1310_p3 = por %p1309_p13, %p1308_p10 }
  0x67   : > { %p1311_p7 = pnand %p1310_p3, %p1304_p8 }
  0x68   : > { %1037 = vmatpush3.bf16.msra.mxu0 %v1180_v9  ;;  %1104 = vmatpush3.bf16.msra.mxu1 %v1180_v9 }
  0x69   : > { %1038 = vmatprep.subr.bf16.mxu0 %v1181_v10  ;;  %1097 = vmatprep.subr.bf16.mxu1 %v1181_v10 }
  0x6c   : > { %1039 = vmatpush3.bf16.msra.mxu0 %v1182_v13  ;;  %1105 = vmatpush3.bf16.msra.mxu1 %v1182_v13 }
  0x6d   : > { %1040 = vmatprep.subr.bf16.mxu0 %v1183_v14  ;;  %1098 = vmatprep.subr.bf16.mxu1 %v1183_v14 }
  0x70   : > { %1041 = vmatpush3.bf16.msra.mxu0 %v1184_v15  ;;  %1106 = vmatpush3.bf16.msra.mxu1 %v1184_v15 }
  0x71   : > { %1042 = vmatprep.subr.bf16.mxu0 %v1185_v16  ;;  %1099 = vmatprep.subr.bf16.mxu1 %v1185_v16 }
  0x74   : > { %1043 = vmatpush3.bf16.msra.mxu0 %v1186_v17  ;;  %1107 = vmatpush3.bf16.msra.mxu1 %v1186_v17 }
  0x77   : > { %526 = vmatmul.mubr.bf16.vlgmr.msra.gmra.mrb[0].mxu0 %v1187_v18  ;;  %558 = vmatmul.mubr.bf16.vlgmr.msra.gmra.mrb[0].mxu1 %v1190_v19 }
  0x78   : > { %533 = vmatprep.mubr.bf16.mxu0 %v1193_v20  ;;  %565 = vmatprep.mubr.bf16.mxu1 %v1196_v21 }
  0x7f   : > { %534 = vmatmul.mubr.bf16.gmra.mrb[4].mxu0 %v1195_v22  ;;  %566 = vmatmul.mubr.bf16.gmra.mrb[4].mxu1 %v1198_v23 }
  0x80   : > { %541 = vmatprep.mubr.bf16.mxu0 %v1199_v24  ;;  %573 = vmatprep.mubr.bf16.mxu1 %v1202_v25 }
  0x87   : > { %542 = vmatmul.mubr.bf16.gmra.mrb[8].mxu0 %v1201_v26  ;;  %574 = vmatmul.mubr.bf16.gmra.mrb[8].mxu1 %v1204_v27 }
  0x88   : > { %549 = vmatprep.mubr.bf16.mxu0 %v1205_v28  ;;  %581 = vmatprep.mubr.bf16.mxu1 %v1208_v29 }
  0x8f   : > { %550 = vmatmul.mubr.bf16.gmra.mrb[12].mxu0 %v1207_v30  ;;  %582 = vmatmul.mubr.bf16.gmra.mrb[12].mxu1 %v1210_v31 }
 0x14a   : > { %v1044_v32 = vpop.f32.mrb[0].mxu0  ;;  %v1068_v33 = vpop.f32.mrb[0].mxu1 }
 0x14b   : > { %v1045_v35 = vpop.f32.mrb[1].mxu0  ;;  %v1069_v36 = vpop.f32.mrb[1].mxu1 }
 0x14c   : > { %v1046_v37 = vadd.f32 %v1045_v35, %v1044_v32  ;;  %v1070_v38 = vadd.f32 %v1069_v36, %v1068_v33  ;;  %v1047_v39 = vpop.f32.mrb[2].mxu0  ;;  %v1071_v40 = vpop.f32.mrb[2].mxu1 }
 0x14d   : > { %v1048_v41 = vpop.f32.mrb[3].mxu0  ;;  %v1072_v42 = vpop.f32.mrb[3].mxu1 }
 0x14e   : > { %v1589_v43 = vadd.f32 %v1046_v37, %v1586_v34  ;;  %v1049_v44 = vadd.f32 %v1048_v41, %v1047_v39  ;;  %v1073_v45 = vadd.f32 %v1072_v42, %v1071_v40  ;;  %v1599_v48 = vadd.f32 %v1070_v38, %v1586_v34 }
 0x150   : > { %v1592_v46 = vadd.f32 %v1049_v44, %v1586_v34  ;;  %v1595_v47 = vadd.f32 %v1073_v45, %v1586_v34  ;;  %592 = vadd.xlane.f32.xlu0 %v1589_v43  ;;  %v640_v0 = vmul.f32 %v1589_v43, %v1589_v43  ;;  %v648_v11 = vmul.f32 %v1599_v48, %v1599_v48 }
 0x152   : > { %610 = vadd.xlane.f32.xlu1 %v1595_v47  ;;  %v1050_v49 = vpop.f32.mrb[4].mxu0  ;;  %v1074_v50 = vpop.f32.mrb[4].mxu1  ;;  %v641_v54 = vmul.f32 %v1592_v46, %v1592_v46  ;;  %v649_v62 = vmul.f32 %v1595_v47, %v1595_v47 }
 0x153   : > { %v1051_v51 = vpop.f32.mrb[5].mxu0  ;;  %v1075_v52 = vpop.f32.mrb[5].mxu1 }
 0x154   : > { %608 = vadd.xlane.f32.xlu0 %v1599_v48  ;;  %v1052_v53 = vadd.f32 %v1051_v51, %v1050_v49  ;;  %v1053_v55 = vpop.f32.mrb[6].mxu0  ;;  %v1076_v56 = vadd.f32 %v1075_v52, %v1074_v50  ;;  %v1077_v57 = vpop.f32.mrb[6].mxu1 }
 0x155   : > { %v1054_v58 = vpop.f32.mrb[7].mxu0  ;;  %v1078_v59 = vpop.f32.mrb[7].mxu1 }
 0x156   : > { %658 = vadd.xlane.f32.xlu1 %v641_v54  ;;  %v1055_v60 = vadd.f32 %v1054_v58, %v1053_v55  ;;  %v1079_v61 = vadd.f32 %v1078_v59, %v1077_v57  ;;  %v1609_v63 = vadd.f32 %v1052_v53, %v1586_v34  ;;  %v1620_v15 = vadd.f32 %v1076_v56, %v1586_v34 }
 0x158   : > { %594 = vadd.xlane.f32.xlu0 %v1592_v46  ;;  %v1617_v14 = vadd.f32 %v1055_v60, %v1586_v34  ;;  %v1624_v20 = vadd.f32 %v1079_v61, %v1586_v34  ;;  %v642_v27 = vmul.f32 %v1609_v63, %v1609_v63  ;;  %v650_v31 = vmul.f32 %v1620_v15, %v1620_v15 }
 0x15a   : > { %674 = vadd.xlane.f32.xlu1 %v649_v62  ;;  %v1056_v1 = vpop.f32.mrb[8].mxu0  ;;  %v1080_v2 = vpop.f32.mrb[8].mxu1  ;;  %v643_v30 = vmul.f32 %v1617_v14, %v1617_v14  ;;  %v651_v33 = vmul.f32 %v1624_v20, %v1624_v20 }
 0x15b   : > { %v1057_v3 = vpop.f32.mrb[9].mxu0  ;;  %v1081_v4 = vpop.f32.mrb[9].mxu1 }
 0x15c   : > { %656 = vadd.xlane.f32.xlu0 %v640_v0  ;;  %v1058_v5 = vadd.f32 %v1057_v3, %v1056_v1  ;;  %v1059_v6 = vpop.f32.mrb[10].mxu0  ;;  %v1082_v7 = vadd.f32 %v1081_v4, %v1080_v2  ;;  %v1083_v8 = vpop.f32.mrb[10].mxu1 }
 0x15d   : > { %v1060_v9 = vpop.f32.mrb[11].mxu0  ;;  %v1084_v10 = vpop.f32.mrb[11].mxu1 }
 0x15e   : > { %596 = vadd.xlane.f32.xlu1 %v1609_v63  ;;  %v1061_v12 = vadd.f32 %v1060_v9, %v1059_v6  ;;  %v1085_v13 = vadd.f32 %v1084_v10, %v1083_v8  ;;  %v1635_v32 = vadd.f32 %v1058_v5, %v1586_v34  ;;  %v1643_v36 = vadd.f32 %v1082_v7, %v1586_v34 }
 0x160   : > { %672 = vadd.xlane.f32.xlu0 %v648_v11  ;;  %v1640_v35 = vadd.f32 %v1061_v12, %v1586_v34  ;;  %v1648_v37 = vadd.f32 %v1085_v13, %v1586_v34  ;;  %v644_v38 = vmul.f32 %v1635_v32, %v1635_v32  ;;  %v652_v40 = vmul.f32 %v1643_v36, %v1643_v36 }
 0x162   : > { %598 = vadd.xlane.f32.xlu1 %v1617_v14  ;;  %v1062_v16 = vpop.f32.mrb[12].mxu0  ;;  %v1086_v17 = vpop.f32.mrb[12].mxu1  ;;  %v645_v39 = vmul.f32 %v1640_v35, %v1640_v35  ;;  %v653_v42 = vmul.f32 %v1648_v37, %v1648_v37 }
 0x163   : > { %v1063_v18 = vpop.f32.mrb[13].mxu0  ;;  %v1087_v19 = vpop.f32.mrb[13].mxu1 }
 0x164   : > { %612 = vadd.xlane.f32.xlu0 %v1620_v15  ;;  %v1064_v21 = vadd.f32 %v1063_v18, %v1062_v16  ;;  %v1065_v22 = vpop.f32.mrb[14].mxu0  ;;  %v1088_v23 = vadd.f32 %v1087_v19, %v1086_v17  ;;  %v1089_v24 = vpop.f32.mrb[14].mxu1 }
 0x165   : > { %v1066_v25 = vpop.f32.mrb[15].mxu0  ;;  %v1090_v26 = vpop.f32.mrb[15].mxu1 }
 0x166   : > { %614 = vadd.xlane.f32.xlu1 %v1624_v20  ;;  %v1067_v28 = vadd.f32 %v1066_v25, %v1065_v22  ;;  %v1091_v29 = vadd.f32 %v1090_v26, %v1089_v24  ;;  %v1659_v41 = vadd.f32 %v1064_v21, %v1586_v34  ;;  %v1667_v45 = vadd.f32 %v1088_v23, %v1586_v34 }
 0x168   : > { %660 = vadd.xlane.f32.xlu0 %v642_v27  ;;  %v1664_v44 = vadd.f32 %v1067_v28, %v1586_v34  ;;  %v1672_v49 = vadd.f32 %v1091_v29, %v1586_v34  ;;  %v646_v50 = vmul.f32 %v1659_v41, %v1659_v41  ;;  %v654_v52 = vmul.f32 %v1667_v45, %v1667_v45 }
 0x16a   : > { %662 = vadd.xlane.f32.xlu1 %v643_v30  ;;  %v647_v51 = vmul.f32 %v1664_v44, %v1664_v44  ;;  %v655_v34 = vmul.f32 %v1672_v49, %v1672_v49 }
 0x16c   : > { %676 = vadd.xlane.f32.xlu0 %v650_v31 }
 0x16e   : > { %678 = vadd.xlane.f32.xlu1 %v651_v33 }
 0x170   : > { %600 = vadd.xlane.f32.xlu0 %v1635_v32 }
 0x172   : > { %602 = vadd.xlane.f32.xlu1 %v1640_v35 }
 0x174   : > { %616 = vadd.xlane.f32.xlu0 %v1643_v36 }
 0x176   : > { %618 = vadd.xlane.f32.xlu1 %v1648_v37 }
 0x178   : > { %664 = vadd.xlane.f32.xlu0 %v644_v38 }
 0x17a   : > { %666 = vadd.xlane.f32.xlu1 %v645_v39 }
 0x17c   : > { %680 = vadd.xlane.f32.xlu0 %v652_v40 }
 0x17e   : > { %682 = vadd.xlane.f32.xlu1 %v653_v42 }
 0x180   : > { %604 = vadd.xlane.f32.xlu0 %v1659_v41 }
 0x182   : > { %606 = vadd.xlane.f32.xlu1 %v1664_v44 }
 0x184   : > { %620 = vadd.xlane.f32.xlu0 %v1667_v45 }
 0x186   : > { %622 = vadd.xlane.f32.xlu1 %v1672_v49 }
 0x188   : > { %668 = vadd.xlane.f32.xlu0 %v646_v50 }
 0x18a   : > { %670 = vadd.xlane.f32.xlu1 %v647_v51 }
 0x18c   : > { %684 = vadd.xlane.f32.xlu0 %v654_v52 }
 0x18e   : > { %686 = vadd.xlane.f32.xlu1 %v655_v34 }
 0x1dd   : > { %v593_v53 = vpop.xlane.xlu0 %592 }
 0x1de   : > { %v1686_v59 = vmul.f32 0.0078125, %v593_v53 }
 0x1df   : > { %v611_v54 = vpop.xlane.xlu1 %610 }
 0x1e0   : > { %v1684_v57 = vmul.f32 0.0078125, %v611_v54  ;;  %v704_v4 = vmul.f32 %v1686_v59, %v1686_v59 }
 0x1e1   : > { %v609_v55 = vpop.xlane.xlu0 %608 }
 0x1e2   : > { %v713_v62 = vmul.f32 %v1684_v57, %v1684_v57  ;;  %v1692_v8 = vmul.f32 0.0078125, %v609_v55  ;;  %v761_v52 = vsub.f32 %v1595_v47, %v1684_v57  ;;  %v752_v47 = vsub.f32 %v1589_v43, %v1686_v59 }
 0x1e3   : > { %v659_v56 = vpop.xlane.xlu1 %658 }
 0x1e4   : > { %v689_v0 = vmul.f32 0.0078125, %v659_v56  ;;  %v712_v19 = vmul.f32 %v1692_v8, %v1692_v8  ;;  %v1714_v56 = vld [vmem:[%s1891_s3] ss:$0 sm:$0xff] }
 0x1e5   : > { %v595_v58 = vpop.xlane.xlu0 %594 }
 0x1e6   : > { %v625_v60 = vmul.f32 0.0078125, %v595_v58 }
 0x1e7   : > { %v675_v61 = vpop.xlane.xlu1 %674 }
 0x1e8   : > { %v705_v1 = vmul.f32 %v625_v60, %v625_v60  ;;  %v697_v2 = vmul.f32 0.0078125, %v675_v61  ;;  %v753_v34 = vsub.f32 %v1592_v46, %v625_v60 }
 0x1e9   : > { %v657_v3 = vpop.xlane.xlu0 %656 }
 0x1ea   : > { %v721_v5 = vsub.f32 %v689_v0, %v705_v1  ;;  %v729_v6 = vsub.f32 %v697_v2, %v713_v62  ;;  %v688_v7 = vmul.f32 0.0078125, %v657_v3  ;;  %v1723_v2 = vld [vmem:[%s1892_s4] ss:$0 sm:$0xff] }
 0x1eb   : > { %v597_v9 = vpop.xlane.xlu1 %596 }
 0x1ec   : > { %v737_v10 = vmax.f32 %v721_v5, 0.0  ;;  %v745_v11 = vmax.f32 %v729_v6, 0.0  ;;  %v720_v12 = vsub.f32 %v688_v7, %v704_v4  ;;  %v1696_v26 = vmul.f32 0.0078125, %v597_v9 }
 0x1ed   : > { %v673_v13 = vpop.xlane.xlu0 %672 }
 0x1ee   : > { %v769_v16 = vadd.f32 1e-06, %v737_v10  ;;  %v777_v17 = vadd.f32 1e-06, %v745_v11  ;;  %v736_v18 = vmax.f32 %v720_v12, 0.0  ;;  %v696_v21 = vmul.f32 0.0078125, %v673_v13 }
 0x1ef   : > { %v599_v22 = vpop.xlane.xlu1 %598  ;;  %v706_v33 = vmul.f32 %v1696_v26, %v1696_v26 }
 0x1f0   : > { %1211 = vrsqrt.f32 %v769_v16  ;;  %v768_v23 = vadd.f32 1e-06, %v736_v18  ;;  %v728_v24 = vsub.f32 %v696_v21, %v712_v19  ;;  %v1698_v29 = vmul.f32 0.0078125, %v599_v22 }
 0x1f1   : > { %1213 = vrsqrt.f32 %v777_v17  ;;  %v613_v25 = vpop.xlane.xlu0 %612  ;;  %v760_v21 = vsub.f32 %v1599_v48, %v1692_v8 }
 0x1f2   : > { %1215 = vrsqrt.f32 %v768_v23  ;;  %v744_v27 = vmax.f32 %v728_v24, 0.0  ;;  %v1702_v38 = vmul.f32 0.0078125, %v613_v25  ;;  %v707_v42 = vmul.f32 %v1698_v29, %v1698_v29 }
 0x1f3   : > { %v615_v28 = vpop.xlane.xlu1 %614 }
 0x1f4   : > { %v776_v30 = vadd.f32 1e-06, %v744_v27  ;;  %v1709_v53 = vmul.f32 0.0078125, %v615_v28  ;;  %v714_v58 = vmul.f32 %v1702_v38, %v1702_v38 }
 0x1f5   : > { %v661_v31 = vpop.xlane.xlu0 %660 }
 0x1f6   : > { %v690_v39 = vmul.f32 0.0078125, %v661_v31  ;;  %1217 = vrsqrt.f32 %v776_v30  ;;  %v715_v10 = vmul.f32 %v1709_v53, %v1709_v53 }
 0x1f7   : > { %v663_v40 = vpop.xlane.xlu1 %662 }
 0x1f8   : > { %v722_v50 = vsub.f32 %v690_v39, %v706_v33  ;;  %v691_v51 = vmul.f32 0.0078125, %v663_v40 }
 0x1f9   : > { %v677_v54 = vpop.xlane.xlu0 %676 }
 0x1fa   : > { %v1212_v55 = vpop.eup %1211  ;;  %v738_v61 = vmax.f32 %v722_v50, 0.0  ;;  %v723_v62 = vsub.f32 %v691_v51, %v707_v42  ;;  %v698_v0 = vmul.f32 0.0078125, %v677_v54 }
 0x1fb   : > { %v1214_v1 = vpop.eup %1213  ;;  %v801_v46 = vmul.f32 %v1212_v55, %v753_v34  ;;  %v679_v57 = vpop.xlane.xlu1 %678  ;;  %v754_v34 = vsub.f32 %v1609_v63, %v1696_v26 }
 0x1fc   : > { %v1216_v60 = vpop.eup %1215  ;;  %v809_v3 = vmul.f32 %v1214_v1, %v761_v52  ;;  %v770_v4 = vadd.f32 1e-06, %v738_v61  ;;  %v739_v5 = vmax.f32 %v723_v62, 0.0  ;;  %v730_v6 = vsub.f32 %v698_v0, %v714_v58 }
 0x1fd   : > { %v823_v7 = vmul.f32 %v1714_v56, %v801_v46  ;;  %v800_v9 = vmul.f32 %v1216_v60, %v752_v47  ;;  %v699_v43 = vmul.f32 0.0078125, %v679_v57  ;;  %v601_v59 = vpop.xlane.xlu0 %600  ;;  %v755_v1 = vsub.f32 %v1617_v14, %v1698_v29 }
 0x1fe   : > { %v831_v11 = vmul.f32 %v1714_v56, %v809_v3  ;;  %1219 = vrsqrt.f32 %v770_v4  ;;  %v771_v12 = vadd.f32 1e-06, %v739_v5  ;;  %v746_v13 = vmax.f32 %v730_v6, 0.0 }
 0x1ff   : > { %v845_v16 = vadd.f32 %v1723_v2, %v823_v7  ;;  %v822_v17 = vmul.f32 %v1714_v56, %v800_v9  ;;  %v731_v18 = vsub.f32 %v699_v43, %v715_v10  ;;  %v603_v19 = vpop.xlane.xlu1 %602  ;;  %v1741_v48 = vmul.f32 0.0078125, %v601_v59 }
 0x200   : > { %v853_v22 = vadd.f32 %v1723_v2, %v831_v11  ;;  %1221 = vrsqrt.f32 %v771_v12  ;;  %v778_v23 = vadd.f32 1e-06, %v746_v13  ;;  %v1218_v24 = vpop.eup %1217  ;;  %v1745_v39 = vmul.f32 0.0078125, %v603_v19 }
 0x201   : > { %861 = vst [vmem:[%s1736_s10 + $0x8] sm:$0xff] %v845_v16  ;;  %v844_v25 = vadd.f32 %v1723_v2, %v822_v17  ;;  %v747_v27 = vmax.f32 %v731_v18, 0.0  ;;  %v617_v28 = vpop.xlane.xlu0 %616  ;;  %v808_v30 = vmul.f32 %v1218_v24, %v760_v21  ;;  %v708_v50 = vmul.f32 %v1741_v48, %v1741_v48 }
 0x202   : > { %869 = vst [vmem:[%s1736_s10 + $0x48] sm:$0xff] %v853_v22  ;;  %1223 = vrsqrt.f32 %v778_v23  ;;  %v1750_v51 = vmul.f32 0.0078125, %v617_v28  ;;  %v709_v61 = vmul.f32 %v1745_v39, %v1745_v39  ;;  %v762_v4 = vsub.f32 %v1620_v15, %v1702_v38 }
 0x203   : > { %860 = vst [vmem:[%s1736_s10] sm:$0xff] %v844_v25  ;;  %v779_v8 = vadd.f32 1e-06, %v747_v27  ;;  %v619_v31 = vpop.xlane.xlu1 %618  ;;  %v830_v33 = vmul.f32 %v1714_v56, %v808_v30  ;;  %v763_v11 = vsub.f32 %v1624_v20, %v1709_v53 }
 0x204   : > { %v1754_v54 = vmul.f32 0.0078125, %v619_v31  ;;  %v716_v60 = vmul.f32 %v1750_v51, %v1750_v51 }
 0x205   : > { %1225 = vrsqrt.f32 %v779_v8  ;;  %v665_v40 = vpop.xlane.xlu0 %664  ;;  %v852_v42 = vadd.f32 %v1723_v2, %v830_v33 }
 0x206   : > { %v692_v52 = vmul.f32 0.0078125, %v665_v40  ;;  %v717_v7 = vmul.f32 %v1754_v54, %v1754_v54 }
 0x207   : > { %v667_v55 = vpop.xlane.xlu1 %666  ;;  %868 = vst [vmem:[%s1736_s10 + $0x40] sm:$0xff] %v852_v42 }
 0x208   : > { %v1220_v58 = vpop.eup %1219  ;;  %v724_v62 = vsub.f32 %v692_v52, %v708_v50  ;;  %v693_v0 = vmul.f32 0.0078125, %v667_v55  ;;  %v756_v55 = vsub.f32 %v1635_v32, %v1741_v48 }
 0x209   : > { %v802_v47 = vmul.f32 %v1220_v58, %v754_v34  ;;  %v681_v46 = vpop.xlane.xlu0 %680 }
 0x20a   : > { %v1222_v57 = vpop.eup %1221  ;;  %v740_v63 = vmax.f32 %v724_v62, 0.0  ;;  %v725_v26 = vsub.f32 %v693_v0, %v709_v61  ;;  %v700_v3 = vmul.f32 0.0078125, %v681_v46  ;;  %v757_v46 = vsub.f32 %v1640_v35, %v1745_v39 }
 0x20b   : > { %v824_v5 = vmul.f32 %v1714_v56, %v802_v47  ;;  %v803_v6 = vmul.f32 %v1222_v57, %v755_v1  ;;  %v683_v9 = vpop.xlane.xlu1 %682 }
 0x20c   : > { %v1224_v14 = vpop.eup %1223  ;;  %v772_v29 = vadd.f32 1e-06, %v740_v63  ;;  %v741_v10 = vmax.f32 %v725_v26, 0.0  ;;  %v732_v43 = vsub.f32 %v700_v3, %v716_v60  ;;  %v701_v59 = vmul.f32 0.0078125, %v683_v9 }
 0x20d   : > { %v846_v12 = vadd.f32 %v1723_v2, %v824_v5  ;;  %v825_v15 = vmul.f32 %v1714_v56, %v803_v6  ;;  %v810_v38 = vmul.f32 %v1224_v14, %v762_v4  ;;  %v605_v13 = vpop.xlane.xlu0 %604  ;;  %v764_v4 = vsub.f32 %v1643_v36, %v1750_v51 }
 0x20e   : > { %1227 = vrsqrt.f32 %v772_v29  ;;  %v773_v16 = vadd.f32 1e-06, %v741_v10  ;;  %v748_v17 = vmax.f32 %v732_v43, 0.0  ;;  %v733_v18 = vsub.f32 %v701_v59, %v717_v7 }
 0x20f   : > { %v1226_v19 = vpop.eup %1225  ;;  %862 = vst [vmem:[%s1736_s10 + $0x10] sm:$0xff] %v846_v12  ;;  %v847_v21 = vadd.f32 %v1723_v2, %v825_v15  ;;  %v832_v22 = vmul.f32 %v1714_v56, %v810_v38  ;;  %v607_v23 = vpop.xlane.xlu1 %606  ;;  %v1778_v8 = vmul.f32 0.0078125, %v605_v13  ;;  %v765_v43 = vsub.f32 %v1648_v37, %v1754_v54 }
 0x210   : > { %v811_v20 = vmul.f32 %v1226_v19, %v763_v11  ;;  %1229 = vrsqrt.f32 %v773_v16  ;;  %v780_v53 = vadd.f32 1e-06, %v748_v17  ;;  %v749_v24 = vmax.f32 %v733_v18, 0.0 }
 0x211   : > { %863 = vst [vmem:[%s1736_s10 + $0x18] sm:$0xff] %v847_v21  ;;  %v854_v25 = vadd.f32 %v1723_v2, %v832_v22  ;;  %v621_v27 = vpop.xlane.xlu0 %620  ;;  %v1782_v40 = vmul.f32 0.0078125, %v607_v23  ;;  %v710_v50 = vmul.f32 %v1778_v8, %v1778_v8  ;;  %v758_v23 = vsub.f32 %v1659_v41, %v1778_v8 }
 0x212   : > { %v833_v28 = vmul.f32 %v1714_v56, %v811_v20  ;;  %1231 = vrsqrt.f32 %v780_v53  ;;  %v781_v30 = vadd.f32 1e-06, %v749_v24  ;;  %v1787_v52 = vmul.f32 0.0078125, %v621_v27 }
 0x213   : > { %870 = vst [vmem:[%s1736_s10 + $0x50] sm:$0xff] %v854_v25  ;;  %v623_v31 = vpop.xlane.xlu1 %622  ;;  %v711_v0 = vmul.f32 %v1782_v40, %v1782_v40  ;;  %v759_v53 = vsub.f32 %v1664_v44, %v1782_v40 }
 0x214   : > { %v855_v33 = vadd.f32 %v1723_v2, %v833_v28  ;;  %1233 = vrsqrt.f32 %v781_v30  ;;  %v1791_v58 = vmul.f32 0.0078125, %v623_v31  ;;  %v718_v26 = vmul.f32 %v1787_v52, %v1787_v52 }
 0x215   : > { %v669_v42 = vpop.xlane.xlu0 %668  ;;  %v766_v27 = vsub.f32 %v1667_v45, %v1787_v52 }
 0x216   : > { %871 = vst [vmem:[%s1736_s10 + $0x58] sm:$0xff] %v855_v33  ;;  %v694_v34 = vmul.f32 0.0078125, %v669_v42  ;;  %v719_v7 = vmul.f32 %v1791_v58, %v1791_v58  ;;  %v767_v33 = vsub.f32 %v1672_v49, %v1791_v58 }
 0x217   : > { %v671_v61 = vpop.xlane.xlu1 %670 }
 0x218   : > { %v1228_v62 = vpop.eup %1227  ;;  %v726_v1 = vsub.f32 %v694_v34, %v710_v50  ;;  %v695_v47 = vmul.f32 0.0078125, %v671_v61 }
 0x219   : > { %v804_v57 = vmul.f32 %v1228_v62, %v756_v55  ;;  %v685_v60 = vpop.xlane.xlu0 %684 }
 0x21a   : > { %v1230_v63 = vpop.eup %1229  ;;  %v742_v3 = vmax.f32 %v726_v1, 0.0  ;;  %v727_v32 = vsub.f32 %v695_v47, %v711_v0  ;;  %v702_v48 = vmul.f32 0.0078125, %v685_v60 }
 0x21b   : > { %v826_v5 = vmul.f32 %v1714_v56, %v804_v57  ;;  %v805_v6 = vmul.f32 %v1230_v63, %v757_v46  ;;  %v687_v35 = vpop.xlane.xlu1 %686 }
 0x21c   : > { %v1232_v39 = vpop.eup %1231  ;;  %v774_v9 = vadd.f32 1e-06, %v742_v3  ;;  %v743_v14 = vmax.f32 %v727_v32, 0.0  ;;  %v734_v29 = vsub.f32 %v702_v48, %v718_v26  ;;  %v703_v10 = vmul.f32 0.0078125, %v687_v35 }
 0x21d   : > { %v848_v59 = vadd.f32 %v1723_v2, %v826_v5  ;;  %v827_v36 = vmul.f32 %v1714_v56, %v805_v6  ;;  %v812_v51 = vmul.f32 %v1232_v39, %v764_v4 }
 0x21e   : > { %v1234_v11 = vpop.eup %1233  ;;  %1235 = vrsqrt.f32 %v774_v9  ;;  %v775_v12 = vadd.f32 1e-06, %v743_v14  ;;  %v750_v15 = vmax.f32 %v734_v29, 0.0  ;;  %v735_v38 = vsub.f32 %v703_v10, %v719_v7 }
 0x21f   : > { %864 = vst [vmem:[%s1736_s10 + $0x20] sm:$0xff] %v848_v59  ;;  %v849_v13 = vadd.f32 %v1723_v2, %v827_v36  ;;  %v834_v16 = vmul.f32 %v1714_v56, %v812_v51  ;;  %v813_v17 = vmul.f32 %v1234_v11, %v765_v43 }
 0x220   : > { %1237 = vrsqrt.f32 %v775_v12  ;;  %v782_v37 = vadd.f32 1e-06, %v750_v15  ;;  %v751_v54 = vmax.f32 %v735_v38, 0.0 }
 0x221   : > { %865 = vst [vmem:[%s1736_s10 + $0x28] sm:$0xff] %v849_v13  ;;  %v856_v18 = vadd.f32 %v1723_v2, %v834_v16  ;;  %v835_v19 = vmul.f32 %v1714_v56, %v813_v17 }
 0x222   : > { %1239 = vrsqrt.f32 %v782_v37  ;;  %v783_v21 = vadd.f32 1e-06, %v751_v54 }
 0x223   : > { %872 = vst [vmem:[%s1736_s10 + $0x60] sm:$0xff] %v856_v18  ;;  %v857_v22 = vadd.f32 %v1723_v2, %v835_v19 }
 0x224   : > { %1241 = vrsqrt.f32 %v783_v21 }
 0x225   : > { %873 = vst [vmem:[%s1736_s10 + $0x68] sm:$0xff] %v857_v22 }
 0x228   : > { %v1236_v20 = vpop.eup %1235 }
 0x229   : > { %v806_v24 = vmul.f32 %v1236_v20, %v758_v23 }
 0x22a   : > { %v1238_v25 = vpop.eup %1237 }
 0x22b   : > { %v828_v28 = vmul.f32 %v1714_v56, %v806_v24  ;;  %v807_v30 = vmul.f32 %v1238_v25, %v759_v53 }
 0x22c   : > { %v1240_v31 = vpop.eup %1239 }
 0x22d   : > { %v850_v41 = vadd.f32 %v1723_v2, %v828_v28  ;;  %v829_v44 = vmul.f32 %v1714_v56, %v807_v30  ;;  %v814_v8 = vmul.f32 %v1240_v31, %v766_v27 }
 0x22e   : > { %v1242_v40 = vpop.eup %1241 }
 0x22f   : > { %866 = vst [vmem:[%s1736_s10 + $0x30] sm:$0xff] %v850_v41  ;;  %v851_v42 = vadd.f32 %v1723_v2, %v829_v44  ;;  %v836_v45 = vmul.f32 %v1714_v56, %v814_v8  ;;  %v815_v50 = vmul.f32 %v1242_v40, %v767_v33 }
 0x231   : > { %867 = vst [vmem:[%s1736_s10 + $0x38] sm:$0xff] %v851_v42  ;;  %v858_v49 = vadd.f32 %v1723_v2, %v836_v45  ;;  %v837_v52 = vmul.f32 %v1714_v56, %v815_v50 }
 0x233   : > { %874 = vst [vmem:[%s1736_s10 + $0x70] sm:$0xff] %v858_v49  ;;  %v859_v34 = vadd.f32 %v1723_v2, %v837_v52 }
 0x235   : > { %875 = vst [vmem:[%s1736_s10 + $0x78] sm:$0xff] %v859_v34 }
 0x236   : > { %1314 = shalt.err (!%p1311_p7)
}
 0x237   : > { %s1315_s26 = scalar_lea.hbm %s1839_s17, 2048  ;;  %s1319_s7 = scalar_lea.hbm %s1893_s5, 4096 }
 0x238   : > { %p1316_p9 = scmp.ne.s32.totalorder %s1839_s17, %s1315_s26  ;;  %p1320_p5 = scmp.lt.u32.totalorder %s1839_s17, %s1893_s5 }
 0x239   : > { %p1321_p11 = scmp.lt.u32.totalorder %s1319_s7, %s1315_s26  ;;  %p1323_p4 = scmp.lt.u32.totalorder %s1315_s26, %s1839_s17 }
 0x23a   : > { %p1317_p2 = pnand %p1316_p9, %p1503_p12 }
 0x23b   : > { %p1322_p1 = por %p1321_p11, %p1320_p5 }
 0x23c   : > { %p1318_p0 = pneg %p1317_p2 }
 0x23d   : > { %p1324_p6 = por %p1323_p4, %p1322_p1 }
 0x23f   : > { %p1325_p8 = pnand %p1324_p6, %p1318_p0 }
 0x241   : > { %1328 = shalt.err (!%p1325_p8)
}
 0x242   : > { %s1380_s29 = smov 128   ;;  %s1381_s28 = smov 8  }
 0x243   : > { %1114 = dma.vmem_to_hbm [thread:$0]  (%p1503_p12), %s1841_s13, 2048, %s1839_s17, %s877_s22, %s1380_s29, %s1380_s29, %s1381_s28  }
 0x244 PF: > { %s905_s16 = sand.u32 1, %s1359_s18   ;;  %p1908_p10 = scmp.ne.s32.totalorder %s1898_s25, 0 }
 0x245   : > { %p1909_p13 = scmp.ge.s32.totalorder %s1371_s21, 2  ;;  %s906_s27 = scalar_lea.sflag [#allocation4], %s905_s16 }
 0x247   : > { %p1125_p3 = pnand %p1909_p13, %p1908_p10 }
 0x249   : > { %1354 = dma.done.wait (!%p1125_p3), %s906_s27, 2048  }
 0x24a   : > { %1356 = vsyncadd (!%p1125_p3), %s906_s27, 4294965248  ;;  %p19_p7 = scmp.ge.s32.totalorder %s1468_s30, 4   ;;  %s1910_s18 = smov %s1363_s19 }
 0x24b   : > { %s1911_s19 = smov %s1367_s20  ;;  %s1912_s20 = smov %s1499_s8 }
 0x24c   : > { %s1913_s21 = smov %s1468_s30  ;;  %21 = sbr.rel (!%p19_p7) target bundleno = 6 (0x6), region = 89 }
 0x253   :  { %911 = vsyncpa [#allocation3], 1 }
 0x254   :  { %913 = vsyncpa [#allocation3 + $0x1], 1 }
 0x255   :  { %914 = vsyncpa [#allocation6], 1 }
 0x256   :  { %915 = vsyncpa [#allocation4], 1 }
 0x257   :  { %917 = vsyncpa [#allocation4 + $0x1], 1 }

</bundles_post_ra>
